<compile_context>
chip_gen: v6e
topology: v6e:2x2x1
jax: 0.10.0
libtpu: 0.0.40
codegen_flags: <defaults>
</compile_context>

<pallas_src>
import functools

import jax
import jax.numpy as jnp
from jax.experimental import pallas as pl
from jax.experimental.pallas import tpu as pltpu


def _round_up(a, b):
    return (a + b - 1) // b * b


def _pick_tiles(n_pad):
    # Row tile: prefer big tiles, but keep >= 2 row tiles so the parallel axis can
    # shard across v7x's two TensorCores.  K tile: largest 128-multiple divisor so
    # fewer accumulator steps; all choices stay well under the default scoped VMEM
    # (<= ~7 MiB double-buffered even at tm=512, tk=2048), including v7x's 64 MiB.
    tm = 128
    for cand in (512, 256):
        if n_pad % cand == 0 and n_pad // cand >= 2:
            tm = cand
            break
    tk = 128
    for cand in (2048, 1024, 512, 256):
        if n_pad % cand == 0:
            tk = cand
            break
    return tm, tk


# --------------------------------------------------------------------------------------
# General path: one pallas_call per SAGEConv layer, row-tiled + K-tiled aggregation.
# --------------------------------------------------------------------------------------
def _sage_conv_kernel(adj_ref, xk_ref, xrow_ref, invd_ref, wl_ref, wr_ref, b_ref,
                      out_ref, acc_ref, *, apply_relu):
    k = pl.program_id(1)

    @pl.when(k == 0)
    def _():
        acc_ref[...] = jnp.zeros_like(acc_ref)

    # Partial neighbor sum for this K tile: (tm, tk) @ (tk, hp), f32 accumulation.
    acc_ref[...] += jnp.dot(adj_ref[...], xk_ref[...],
                            preferred_element_type=jnp.float32)

    @pl.when(k == pl.num_programs(1) - 1)
    def _():
        # Mean aggregation: f32 reciprocal-degree post-scale (exact counts in adj).
        agg = (acc_ref[...] * invd_ref[...]).astype(jnp.bfloat16)
        h = (jnp.dot(agg, wl_ref[...], preferred_element_type=jnp.float32)
             + jnp.dot(xrow_ref[...], wr_ref[...], preferred_element_type=jnp.float32)
             + b_ref[...])
        if apply_relu:
            h = jnp.maximum(h, 0.0)
        out_ref[...] = h.astype(out_ref.dtype)


def _sage_layer(adj, xfull, inv_deg, wl, wr, b, *, hp, apply_relu, out_dtype):
    n_pad = adj.shape[0]
    tm, tk = _pick_tiles(n_pad)
    kernel = functools.partial(_sage_conv_kernel, apply_relu=apply_relu)
    return pl.pallas_call(
        kernel,
        out_shape=jax.ShapeDtypeStruct((n_pad, hp), out_dtype),
        grid_spec=pltpu.PrefetchScalarGridSpec(
            num_scalar_prefetch=0,
            grid=(n_pad // tm, n_pad // tk),
            in_specs=[
                pl.BlockSpec((tm, tk), lambda i, k: (i, k)),   # adjacency tile (counts)
                pl.BlockSpec((tk, hp), lambda i, k: (k, 0)),   # neighbor features, K tile
                pl.BlockSpec((tm, hp), lambda i, k: (i, 0)),   # root features, row tile
                pl.BlockSpec((tm, 1), lambda i, k: (i, 0)),    # f32 reciprocal degree
                pl.BlockSpec((hp, hp), lambda i, k: (0, 0)),   # lin_l weight (resident)
                pl.BlockSpec((hp, hp), lambda i, k: (0, 0)),   # lin_r weight (resident)
                pl.BlockSpec((1, hp), lambda i, k: (0, 0)),    # bias (resident)
            ],
            out_specs=pl.BlockSpec((tm, hp), lambda i, k: (i, 0)),
            scratch_shapes=[pltpu.VMEM((tm, hp), jnp.float32)],
        ),
        compiler_params=pltpu.CompilerParams(
            dimension_semantics=("parallel", "arbitrary"),
        ),
    )(adj, xfull, xfull, inv_deg, wl, wr, b)


# --------------------------------------------------------------------------------------
# Small-graph path: both SAGEConv layers fused in one grid=(1,) call, fully VMEM-resident.
# --------------------------------------------------------------------------------------
def _gnn_fused_kernel(adj_ref, x_ref, invd_ref, wl1_ref, wr1_ref, b1_ref,
                      wl2_ref, wr2_ref, b2_ref, out_ref):
    adj = adj_ref[...]
    x = x_ref[...]
    invd = invd_ref[...]

    agg1 = (jnp.dot(adj, x, preferred_element_type=jnp.float32) * invd).astype(jnp.bfloat16)
    h1 = (jnp.dot(agg1, wl1_ref[...], preferred_element_type=jnp.float32)
          + jnp.dot(x, wr1_ref[...], preferred_element_type=jnp.float32)
          + b1_ref[...])
    h1 = jnp.maximum(h1, 0.0).astype(jnp.bfloat16)

    agg2 = (jnp.dot(adj, h1, preferred_element_type=jnp.float32) * invd).astype(jnp.bfloat16)
    out = (jnp.dot(agg2, wl2_ref[...], preferred_element_type=jnp.float32)
           + jnp.dot(h1, wr2_ref[...], preferred_element_type=jnp.float32)
           + b2_ref[...])
    out_ref[...] = out.astype(out_ref.dtype)


def _gnn_fused_small(a_pad, x_pad, inv_deg, wl1, wr1, b1, wl2, wr2, b2, *, hp):
    n_pad = a_pad.shape[0]

    def spec(shape):
        return pl.BlockSpec(shape, lambda i: (0,) * len(shape))

    return pl.pallas_call(
        _gnn_fused_kernel,
        out_shape=jax.ShapeDtypeStruct((n_pad, hp), jnp.float32),
        grid_spec=pltpu.PrefetchScalarGridSpec(
            num_scalar_prefetch=0,
            grid=(1,),
            in_specs=[
                spec((n_pad, n_pad)), spec((n_pad, hp)), spec((n_pad, 1)),
                spec((hp, hp)), spec((hp, hp)), spec((1, hp)),
                spec((hp, hp)), spec((hp, hp)), spec((1, hp)),
            ],
            out_specs=spec((n_pad, hp)),
        ),
        compiler_params=pltpu.CompilerParams(dimension_semantics=("arbitrary",)),
    )(a_pad, x_pad, inv_deg, wl1, wr1, b1, wl2, wr2, b2)


# --------------------------------------------------------------------------------------
# Wrapper
# --------------------------------------------------------------------------------------
def gnn_forward(x, edge_index, params, *, force_tiled=False):
    """x: [N, H] float32, edge_index: [2, E] int32 (row 0 = src, row 1 = dst)."""
    n, h = x.shape
    hp = _round_up(max(h, 128), 128)              # lane-dense feature dim
    n_pad = _round_up(max(n, 128), 128)           # lane-dense / full-MXU-K neighbor dim

    src, dst = edge_index[0], edge_index[1]
    # Padded adjacency built once, directly at (n_pad, n_pad).  Edge counts are small
    # integers, so the bf16 cast is exact; mean normalization stays in f32 (inv_deg).
    a_cnt = jnp.zeros((n_pad, n_pad), jnp.float32).at[dst, src].add(1.0)
    deg = jnp.zeros((n_pad, 1), jnp.float32).at[dst, 0].add(1.0)
    inv_deg = jnp.where(deg > 0, 1.0 / jnp.maximum(deg, 1.0), 0.0)
    a_pad = a_cnt.astype(jnp.bfloat16)

    x_pad = jnp.zeros((n_pad, hp), jnp.float32).at[:n, :h].set(x).astype(jnp.bfloat16)

    def pad_w(w):  # PyTorch Linear weight [out, in] -> padded [in, out] bf16
        return jnp.zeros((hp, hp), jnp.float32).at[:h, :h].set(w.T).astype(jnp.bfloat16)

    wl1, wr1 = pad_w(params["wl1"]), pad_w(params["wr1"])
    wl2, wr2 = pad_w(params["wl2"]), pad_w(params["wr2"])
    b1 = jnp.zeros((1, hp), jnp.float32).at[0, :h].set(params["b1"])
    b2 = jnp.zeros((1, hp), jnp.float32).at[0, :h].set(params["b2"])

    if (not force_tiled) and n_pad <= 1024:
        # Tiny graph: one fused pallas_call, everything VMEM-resident.
        out = _gnn_fused_small(a_pad, x_pad, inv_deg, wl1, wr1, b1, wl2, wr2, b2, hp=hp)
    else:
        # General graph: layer 2 needs all rows of h1 -> two pallas_calls.
        h1 = _sage_layer(a_pad, x_pad, inv_deg, wl1, wr1, b1,
                         hp=hp, apply_relu=True, out_dtype=jnp.bfloat16)
        out = _sage_layer(a_pad, h1, inv_deg, wl2, wr2, b2,
                          hp=hp, apply_relu=False, out_dtype=jnp.float32)
    return out[:n, :h]


def _reference(x, edge_index, params):
    """Pure-JAX f32 reference of PyG SAGEConv(mean) x2 with ReLU in between."""
    n, _ = x.shape
    src, dst = edge_index[0], edge_index[1]
    a = jnp.zeros((n, n), jnp.float32).at[dst, src].add(1.0)
    deg = a.sum(axis=1, keepdims=True)
    a_norm = jnp.where(deg > 0, a / jnp.maximum(deg, 1.0), 0.0)

    agg1 = a_norm @ x
    h1 = jax.nn.relu(agg1 @ params["wl1"].T + params["b1"] + x @ params["wr1"].T)
    agg2 = a_norm @ h1
    return agg2 @ params["wl2"].T + params["b2"] + h1 @ params["wr2"].T


if __name__ == "__main__":
    H = 32  # hidden_channels

    key = jax.random.PRNGKey(0)
    k_params, k_small, k_big = jax.random.split(key, 3)

    kp = jax.random.split(k_params, 6)
    scale = 1.0 / jnp.sqrt(H)
    params = {
        "wl1": jax.random.uniform(kp[0], (H, H), jnp.float32, -scale, scale),
        "wr1": jax.random.uniform(kp[1], (H, H), jnp.float32, -scale, scale),
        "b1":  jax.random.uniform(kp[2], (H,),   jnp.float32, -scale, scale),
        "wl2": jax.random.uniform(kp[3], (H, H), jnp.float32, -scale, scale),
        "wr2": jax.random.uniform(kp[4], (H, H), jnp.float32, -scale, scale),
        "b2":  jax.random.uniform(kp[5], (H,),   jnp.float32, -scale, scale),
    }

    # --- Case 1: tiny graph -> fused single pallas_call path ---
    kx, ke = jax.random.split(k_small)
    x = jax.random.normal(kx, (16, H), dtype=jnp.float32)
    edge_index = jax.random.randint(ke, (2, 48), 0, 16, dtype=jnp.int32)
    out = jax.block_until_ready(gnn_forward(x, edge_index, params))
    ref = _reference(x, edge_index, params)
    assert out.shape == (16, H)
    assert jnp.allclose(out, ref, atol=5e-2, rtol=5e-2)

    # --- Case 2: larger graph -> row/K-tiled two-pallas_call path (grid (3,3)/layer) ---
    kx, ke = jax.random.split(k_big)
    x = jax.random.normal(kx, (300, H), dtype=jnp.float32)
    edge_index = jax.random.randint(ke, (2, 1200), 0, 300, dtype=jnp.int32)
    out = jax.block_until_ready(gnn_forward(x, edge_index, params, force_tiled=True))
    ref = _reference(x, edge_index, params)
    assert out.shape == (300, H)
    assert jnp.allclose(out, ref, atol=5e-2, rtol=5e-2)

    print("KERNEL_OK")
</pallas_src>

<mosaic_0001>
module attributes {stable_mosaic.version = 11 : i64} {
  func.func @_gnn_fused_kernel(%arg0: i32, %arg1: memref<128x128xbf16, #tpu.memory_space<vmem>>, %arg2: memref<128x128xbf16, #tpu.memory_space<vmem>>, %arg3: memref<128x1xf32, #tpu.memory_space<vmem>>, %arg4: memref<128x128xbf16, #tpu.memory_space<vmem>>, %arg5: memref<128x128xbf16, #tpu.memory_space<vmem>>, %arg6: memref<1x128xf32, #tpu.memory_space<vmem>>, %arg7: memref<128x128xbf16, #tpu.memory_space<vmem>>, %arg8: memref<128x128xbf16, #tpu.memory_space<vmem>>, %arg9: memref<1x128xf32, #tpu.memory_space<vmem>>, %arg10: memref<128x128xf32, #tpu.memory_space<vmem>>) attributes {dimension_semantics = [#tpu.dimension_semantics<arbitrary>], iteration_bounds = array<i64: 1>, scalar_prefetch = 0 : i64, scratch_operands = 0 : i64, tpu.core_type = #tpu.core_type<tc>, window_params = [{pipeline_mode = #tpu.pipeline_mode<synchronous>, transform_indices = @transform_0, window_bounds = array<i64: 128, 128>}, {pipeline_mode = #tpu.pipeline_mode<synchronous>, transform_indices = @transform_1, window_bounds = array<i64: 128, 128>}, {pipeline_mode = #tpu.pipeline_mode<synchronous>, transform_indices = @transform_2, window_bounds = array<i64: 128, 1>}, {pipeline_mode = #tpu.pipeline_mode<synchronous>, transform_indices = @transform_3, window_bounds = array<i64: 128, 128>}, {pipeline_mode = #tpu.pipeline_mode<synchronous>, transform_indices = @transform_4, window_bounds = array<i64: 128, 128>}, {pipeline_mode = #tpu.pipeline_mode<synchronous>, transform_indices = @transform_5, window_bounds = array<i64: 1, 128>}, {pipeline_mode = #tpu.pipeline_mode<synchronous>, transform_indices = @transform_6, window_bounds = array<i64: 128, 128>}, {pipeline_mode = #tpu.pipeline_mode<synchronous>, transform_indices = @transform_7, window_bounds = array<i64: 128, 128>}, {pipeline_mode = #tpu.pipeline_mode<synchronous>, transform_indices = @transform_8, window_bounds = array<i64: 1, 128>}, {pipeline_mode = #tpu.pipeline_mode<synchronous>, transform_indices = @transform_9, window_bounds = array<i64: 128, 128>}]} {
    %c0 = arith.constant 0 : index
    %c0_0 = arith.constant 0 : index
    %0 = vector.load %arg1[%c0, %c0_0] : memref<128x128xbf16, #tpu.memory_space<vmem>>, vector<128x128xbf16>
    %c0_1 = arith.constant 0 : index
    %c0_2 = arith.constant 0 : index
    %1 = vector.load %arg2[%c0_1, %c0_2] : memref<128x128xbf16, #tpu.memory_space<vmem>>, vector<128x128xbf16>
    %c0_3 = arith.constant 0 : index
    %c0_4 = arith.constant 0 : index
    %2 = vector.load %arg3[%c0_3, %c0_4] : memref<128x1xf32, #tpu.memory_space<vmem>>, vector<128x1xf32>
    %cst = arith.constant dense<0.000000e+00> : vector<128x128xf32>
    %3 = tpu.matmul %0, %1, %cst {dimension_numbers = #tpu.dot_dimension_numbers<[1], [0], [0], [1], [0, 0, 1, 1], [], []>} : vector<128x128xbf16>, vector<128x128xbf16>, vector<128x128xf32> -> vector<128x128xf32>
    %4 = vector.broadcast %2 : vector<128x1xf32> to vector<128x128xf32>
    %5 = arith.mulf %3, %4 : vector<128x128xf32>
    %6 = arith.truncf %5 : vector<128x128xf32> to vector<128x128xbf16>
    %c0_5 = arith.constant 0 : index
    %c0_6 = arith.constant 0 : index
    %7 = vector.load %arg4[%c0_5, %c0_6] : memref<128x128xbf16, #tpu.memory_space<vmem>>, vector<128x128xbf16>
    %cst_7 = arith.constant dense<0.000000e+00> : vector<128x128xf32>
    %8 = tpu.matmul %6, %7, %cst_7 {dimension_numbers = #tpu.dot_dimension_numbers<[1], [0], [0], [1], [0, 0, 1, 1], [], []>} : vector<128x128xbf16>, vector<128x128xbf16>, vector<128x128xf32> -> vector<128x128xf32>
    %c0_8 = arith.constant 0 : index
    %c0_9 = arith.constant 0 : index
    %9 = vector.load %arg5[%c0_8, %c0_9] : memref<128x128xbf16, #tpu.memory_space<vmem>>, vector<128x128xbf16>
    %cst_10 = arith.constant dense<0.000000e+00> : vector<128x128xf32>
    %10 = tpu.matmul %1, %9, %cst_10 {dimension_numbers = #tpu.dot_dimension_numbers<[1], [0], [0], [1], [0, 0, 1, 1], [], []>} : vector<128x128xbf16>, vector<128x128xbf16>, vector<128x128xf32> -> vector<128x128xf32>
    %11 = arith.addf %8, %10 : vector<128x128xf32>
    %c0_11 = arith.constant 0 : index
    %c0_12 = arith.constant 0 : index
    %12 = vector.load %arg6[%c0_11, %c0_12] : memref<1x128xf32, #tpu.memory_space<vmem>>, vector<1x128xf32>
    %13 = vector.broadcast %12 : vector<1x128xf32> to vector<128x128xf32>
    %14 = arith.addf %11, %13 : vector<128x128xf32>
    %cst_13 = arith.constant 0.000000e+00 : f32
    %15 = vector.broadcast %cst_13 : f32 to vector<128x128xf32>
    %16 = arith.maximumf %14, %15 : vector<128x128xf32>
    %17 = arith.truncf %16 : vector<128x128xf32> to vector<128x128xbf16>
    %cst_14 = arith.constant dense<0.000000e+00> : vector<128x128xf32>
    %18 = tpu.matmul %0, %17, %cst_14 {dimension_numbers = #tpu.dot_dimension_numbers<[1], [0], [0], [1], [0, 0, 1, 1], [], []>} : vector<128x128xbf16>, vector<128x128xbf16>, vector<128x128xf32> -> vector<128x128xf32>
    %19 = vector.broadcast %2 : vector<128x1xf32> to vector<128x128xf32>
    %20 = arith.mulf %18, %19 : vector<128x128xf32>
    %21 = arith.truncf %20 : vector<128x128xf32> to vector<128x128xbf16>
    %c0_15 = arith.constant 0 : index
    %c0_16 = arith.constant 0 : index
    %22 = vector.load %arg7[%c0_15, %c0_16] : memref<128x128xbf16, #tpu.memory_space<vmem>>, vector<128x128xbf16>
    %cst_17 = arith.constant dense<0.000000e+00> : vector<128x128xf32>
    %23 = tpu.matmul %21, %22, %cst_17 {dimension_numbers = #tpu.dot_dimension_numbers<[1], [0], [0], [1], [0, 0, 1, 1], [], []>} : vector<128x128xbf16>, vector<128x128xbf16>, vector<128x128xf32> -> vector<128x128xf32>
    %c0_18 = arith.constant 0 : index
    %c0_19 = arith.constant 0 : index
    %24 = vector.load %arg8[%c0_18, %c0_19] : memref<128x128xbf16, #tpu.memory_space<vmem>>, vector<128x128xbf16>
    %cst_20 = arith.constant dense<0.000000e+00> : vector<128x128xf32>
    %25 = tpu.matmul %17, %24, %cst_20 {dimension_numbers = #tpu.dot_dimension_numbers<[1], [0], [0], [1], [0, 0, 1, 1], [], []>} : vector<128x128xbf16>, vector<128x128xbf16>, vector<128x128xf32> -> vector<128x128xf32>
    %26 = arith.addf %23, %25 : vector<128x128xf32>
    %c0_21 = arith.constant 0 : index
    %c0_22 = arith.constant 0 : index
    %27 = vector.load %arg9[%c0_21, %c0_22] : memref<1x128xf32, #tpu.memory_space<vmem>>, vector<1x128xf32>
    %28 = vector.broadcast %27 : vector<1x128xf32> to vector<128x128xf32>
    %29 = arith.addf %26, %28 : vector<128x128xf32>
    %c0_23 = arith.constant 0 : index
    %c0_24 = arith.constant 0 : index
    %30 = vector.load %arg10[%c0_23, %c0_24] : memref<128x128xf32, #tpu.memory_space<vmem>>, vector<128x128xf32>
    tpu.vector_store %arg10[%c0_23, %c0_24], %29 {strides = array<i32>} : memref<128x128xf32, #tpu.memory_space<vmem>>, vector<128x128xf32>,
    return
  }
  func.func @transform_0(%arg0: i32) -> (i32, i32) {
    %c0_i32 = arith.constant 0 : i32
    %c0_i32_0 = arith.constant 0 : i32
    %c0_i32_1 = arith.constant 0 : i32
    return %c0_i32, %c0_i32_0 : i32, i32
  }
  func.func @transform_1(%arg0: i32) -> (i32, i32) {
    %c0_i32 = arith.constant 0 : i32
    %c0_i32_0 = arith.constant 0 : i32
    %c0_i32_1 = arith.constant 0 : i32
    return %c0_i32, %c0_i32_0 : i32, i32
  }
  func.func @transform_2(%arg0: i32) -> (i32, i32) {
    %c0_i32 = arith.constant 0 : i32
    %c0_i32_0 = arith.constant 0 : i32
    %c0_i32_1 = arith.constant 0 : i32
    return %c0_i32, %c0_i32_0 : i32, i32
  }
  func.func @transform_3(%arg0: i32) -> (i32, i32) {
    %c0_i32 = arith.constant 0 : i32
    %c0_i32_0 = arith.constant 0 : i32
    %c0_i32_1 = arith.constant 0 : i32
    return %c0_i32, %c0_i32_0 : i32, i32
  }
  func.func @transform_4(%arg0: i32) -> (i32, i32) {
    %c0_i32 = arith.constant 0 : i32
    %c0_i32_0 = arith.constant 0 : i32
    %c0_i32_1 = arith.constant 0 : i32
    return %c0_i32, %c0_i32_0 : i32, i32
  }
  func.func @transform_5(%arg0: i32) -> (i32, i32) {
    %c0_i32 = arith.constant 0 : i32
    %c0_i32_0 = arith.constant 0 : i32
    %c0_i32_1 = arith.constant 0 : i32
    return %c0_i32, %c0_i32_0 : i32, i32
  }
  func.func @transform_6(%arg0: i32) -> (i32, i32) {
    %c0_i32 = arith.constant 0 : i32
    %c0_i32_0 = arith.constant 0 : i32
    %c0_i32_1 = arith.constant 0 : i32
    return %c0_i32, %c0_i32_0 : i32, i32
  }
  func.func @transform_7(%arg0: i32) -> (i32, i32) {
    %c0_i32 = arith.constant 0 : i32
    %c0_i32_0 = arith.constant 0 : i32
    %c0_i32_1 = arith.constant 0 : i32
    return %c0_i32, %c0_i32_0 : i32, i32
  }
  func.func @transform_8(%arg0: i32) -> (i32, i32) {
    %c0_i32 = arith.constant 0 : i32
    %c0_i32_0 = arith.constant 0 : i32
    %c0_i32_1 = arith.constant 0 : i32
    return %c0_i32, %c0_i32_0 : i32, i32
  }
  func.func @transform_9(%arg0: i32) -> (i32, i32) {
    %c0_i32 = arith.constant 0 : i32
    %c0_i32_0 = arith.constant 0 : i32
    %c0_i32_1 = arith.constant 0 : i32
    return %c0_i32, %c0_i32_0 : i32, i32
  }
}

</mosaic_0001>

<bundles_post_ra>
// kernel: tpu_custom_call.1
= control target key start
LH: loop header
LB: loop body
LE: loop exit
PB: predicated region body
PF: predicated region fallthrough
CT: control target
= control target key end

     0   :  { %14 = vsyncpa [#allocation3], 0  ;;  %s2176_s0 = inlined_call_operand.vmem [shape: bf16[128,128], index: 0, kind: input, shape index: {}]   ;;  %s2177_s1 = inlined_call_operand.vmem [shape: bf16[128,128], index: 1, kind: input, shape index: {}]   ;;  %s2178_s2 = inlined_call_operand.vmem [shape: f32[128,1], index: 2, kind: input, shape index: {}]   ;;  %s2179_s3 = inlined_call_operand.hbm [shape: bf16[128,128], index: 3, kind: input, shape index: {}]   ;;  %s2180_s4 = inlined_call_operand.hbm [shape: bf16[128,128], index: 4, kind: input, shape index: {}]   ;;  %s2181_s5 = inlined_call_operand.vmem [shape: f32[1,128], index: 5, kind: input, shape index: {}]   ;;  %s2182_s6 = inlined_call_operand.hbm [shape: bf16[128,128], index: 6, kind: input, shape index: {}]   ;;  %s2183_s7 = inlined_call_operand.hbm [shape: bf16[128,128], index: 7, kind: input, shape index: {}]   ;;  %s2184_s8 = inlined_call_operand.vmem [shape: f32[1,128], index: 8, kind: input, shape index: {}]   ;;  %s2185_s9 = inlined_call_operand.hbm [shape: f32[128,128], index: 9, kind: output, shape index: {}]  }
   0x1   :  { %15 = vsyncpa [#allocation6], 0 }
   0x2   :  { %16 = vsyncpa [#allocation9], 0 }
   0x3   :  { %17 = vsyncpa [#allocation4], 0  ;;  %s1810_s30 = smov [#allocation5]   ;;  %s1811_s11 = smov [#allocation2]  }
   0x4   :  { %s41_s10 = sshll.u32 %s1810_s30, 4  ;;  %s29_s12 = sshll.u32 %s1811_s11, 4  ;;  %s42_s10 = int_to_ptr.vmem [resolvable:$true] %s41_s10  ;;  %s30_s12 = int_to_ptr.vmem [resolvable:$true] %s29_s12 }
   0x5   :  { %s1710_s13 = scalar_lea.vmem %s42_s10, 1024  ;;  %p1715_p1 = scmp.lt.s32.totalorder %s42_s10, %s42_s10 }
   0x6   :  { %p1711_p0 = scmp.ne.s32.totalorder %s42_s10, %s1710_s13  ;;  %p1716_p2 = scmp.lt.s32.totalorder %s1710_s13, %s1710_s13 }
   0x8   :  { %p1717_p3 = por %p1716_p2, %p1715_p1 }
   0xa   :  { %p1718_p4 = pnand %p1717_p3, %p1711_p0 }
   0xc   :  { %1721 = shalt.err (!%p1718_p4)
}
   0xd   :  { %s1812_s14 = smov 64   ;;  %s1813_s15 = smov 4  }
   0xe   :  { %47 = dma.hbm_to_vmem [thread:$0]  %s2180_s4, 1024, %s42_s10, [#allocation6], %s1812_s14, %s1812_s14, %s1813_s15  }
   0xf   :  { %s1730_s18 = scalar_lea.vmem %s30_s12, 1024  ;;  %p1735_p6 = scmp.lt.s32.totalorder %s30_s12, %s30_s12 }
  0x10   :  { %p1731_p5 = scmp.ne.s32.totalorder %s30_s12, %s1730_s18  ;;  %p1736_p7 = scmp.lt.s32.totalorder %s1730_s18, %s1730_s18 }
  0x12   :  { %p1737_p8 = por %p1736_p7, %p1735_p6 }
  0x14   :  { %p1738_p9 = pnand %p1737_p8, %p1731_p5 }
  0x16   :  { %1741 = shalt.err (!%p1738_p9)
}
  0x17   :  { %35 = dma.hbm_to_vmem [thread:$0]  %s2179_s3, 1024, %s30_s12, [#allocation3], %s1812_s14, %s1812_s14, %s1813_s15  }
  0x18   :  { %s1814_s21 = smov [#allocation7]   ;;  %s1815_s23 = smov [#allocation8]  }
  0x19   :  { %s55_s22 = sshll.u32 %s1814_s21, 4  ;;  %s67_s24 = sshll.u32 %s1815_s23, 4  ;;  %s56_s22 = int_to_ptr.vmem [resolvable:$true] %s55_s22  ;;  %s68_s24 = int_to_ptr.vmem [resolvable:$true] %s67_s24 }
  0x1a   :  { %s1750_s4 = scalar_lea.vmem %s56_s22, 1024  ;;  %p1755_p11 = scmp.lt.s32.totalorder %s56_s22, %s56_s22 }
  0x1b   :  { %p1751_p10 = scmp.ne.s32.totalorder %s56_s22, %s1750_s4  ;;  %p1756_p12 = scmp.lt.s32.totalorder %s1750_s4, %s1750_s4 }
  0x1d   :  { %p1757_p13 = por %p1756_p12, %p1755_p11 }
  0x1f   :  { %p1758_p0 = pnand %p1757_p13, %p1751_p10 }
  0x21   :  { %1761 = shalt.err (!%p1758_p0)
}
  0x22   :  { %61 = dma.hbm_to_vmem [thread:$0]  %s2182_s6, 1024, %s56_s22, [#allocation6], %s1812_s14, %s1812_s14, %s1813_s15  }
  0x23   :  { %s1770_s3 = scalar_lea.vmem %s68_s24, 1024  ;;  %p1775_p2 = scmp.lt.s32.totalorder %s68_s24, %s68_s24 }
  0x24   :  { %p1771_p1 = scmp.ne.s32.totalorder %s68_s24, %s1770_s3  ;;  %p1776_p3 = scmp.lt.s32.totalorder %s1770_s3, %s1770_s3 }
  0x26   :  { %p1777_p4 = por %p1776_p3, %p1775_p2 }
  0x28   :  { %p1778_p5 = pnand %p1777_p4, %p1771_p1 }
  0x2a   :  { %1781 = shalt.err (!%p1778_p5)
}
  0x2b   :  { %73 = dma.hbm_to_vmem [thread:$0]  %s2183_s7, 1024, %s68_s24, [#allocation9], %s1812_s14, %s1812_s14, %s1813_s15  }
  0x2c   :  { %1802 = dma.done.wait [#allocation3], 1024  }
  0x2d   :  { %1803 = vsyncadd [#allocation3], 4294966272 }
  0x2e   :  { %1804 = dma.done.wait [#allocation6], 2048  }
  0x2f   :  { %1805 = vsyncadd [#allocation6], 4294965248 }
  0x30   :  { %1806 = dma.done.wait [#allocation9], 1024  }
  0x31   :  { %1807 = vsyncadd [#allocation9], 4294966272  ;;  %v1816_v0 = vmov 0   ;;  %v1897_v1 = vld [vmem:[%s2177_s1 + $0x38] sm:$0xff]   ;;  %v1902_v2 = vld [vmem:[%s2177_s1 + $0x30] sm:$0xff]  }
  0x32   :  { %1652 = vset.pattern.permute.xlu0 %v1816_v0  ;;  %1653 = vset.pattern.permute.xlu1 %v1816_v0  ;;  %v1910_v3 = vld [vmem:[%s2177_s1 + $0x28] sm:$0xff]   ;;  %v1915_v4 = vld [vmem:[%s2177_s1 + $0x20] sm:$0xff]   ;;  %v1933_v7 = vld [vmem:[%s2177_s1 + $0x18] sm:$0xff]  }
  0x33   :  { %1450 = vmatprep.subr.bf16.mxu0 %v1897_v1  ;;  %v1661_v5 = vld [vmem:[%s2177_s1] sm:$0xff]   ;;  %v1940_v8 = vld [vmem:[%s2177_s1 + $0x10] sm:$0xff]   ;;  %v122_v11 = vld [vmem:[%s2178_s2 + $0x8] sm:$0xff] }
  0x34   :  { %1451 = vmatpush3.bf16.msra.mxu0 %v1897_v1  ;;  %v1925_v6 = vld [vmem:[%s2176_s0] sm:$0xff]   ;;  %1498 = vmatprep.mubr.bf16.mxu1 %v1661_v5  ;;  %v123_v10 = vld [vmem:[%s2178_s2 + $0x10] sm:$0xff]  ;;  %v124_v12 = vld [vmem:[%s2178_s2 + $0x18] sm:$0xff] }
  0x35   :  { %1452 = vmatprep.subr.bf16.mxu0 %v1902_v2  ;;  %1466 = vmatprep.mubr.bf16.mxu0 %v1925_v6  ;;  %v121_v9 = vld [vmem:[%s2178_s2] sm:$0xff]  ;;  %v1959_v13 = vld [vmem:[%s2177_s1 + $0x8] sm:$0xff]   ;;  %v1670_v16 = vld [vmem:[#allocation5 + $0x38] sm:$0xff]  }
  0x36   :  { %332 = vperm.xlu0 %1652, %v121_v9   ;;  %342 = vperm.xlu1 %1653, %v123_v10   ;;  %v125_v14 = vld [vmem:[%s2178_s2 + $0x20] sm:$0xff]  ;;  %v126_v15 = vld [vmem:[%s2178_s2 + $0x28] sm:$0xff]  ;;  %v1671_v17 = vld [vmem:[#allocation5 + $0x30] sm:$0xff]  }
  0x37   :  { %1482 = vmatprep.subr.bf16.mxu1 %v1670_v16  ;;  %v127_v18 = vld [vmem:[%s2178_s2 + $0x30] sm:$0xff]  ;;  %v128_v19 = vld [vmem:[%s2178_s2 + $0x38] sm:$0xff]  ;;  %v1673_v20 = vld [vmem:[#allocation5 + $0x28] sm:$0xff]  }
  0x38   :  { %1453 = vmatpush3.bf16.msra.mxu0 %v1902_v2  ;;  %1483 = vmatpush3.bf16.msra.mxu1 %v1670_v16  ;;  %v1979_v21 = vld [vmem:[%s2176_s0 + $0x8] sm:$0xff]   ;;  %v1672_v22 = vld [vmem:[#allocation2 + $0x38] sm:$0xff]   ;;  %v1984_v23 = vld [vmem:[%s2176_s0 + $0x10] sm:$0xff]  }
  0x39   :  { %1454 = vmatprep.subr.bf16.mxu0 %v1910_v3  ;;  %1484 = vmatprep.subr.bf16.mxu1 %v1671_v17  ;;  %v129_v24 = vld [vmem:[%s2178_s2 + $0x40] sm:$0xff]  ;;  %v130_v25 = vld [vmem:[%s2178_s2 + $0x48] sm:$0xff]  ;;  %v1674_v26 = vld [vmem:[#allocation2 + $0x30] sm:$0xff]  }
  0x3a   :  { %337 = vperm.xlu0 %1652, %v122_v11   ;;  %347 = vperm.xlu1 %1653, %v124_v12   ;;  %v131_v27 = vld [vmem:[%s2178_s2 + $0x50] sm:$0xff]  ;;  %v132_v28 = vld [vmem:[%s2178_s2 + $0x58] sm:$0xff]  ;;  %v1675_v29 = vld [vmem:[#allocation5 + $0x20] sm:$0xff]  }
  0x3b   :  { %v1677_v30 = vld [vmem:[#allocation5 + $0x18] sm:$0xff]   ;;  %v1676_v31 = vld [vmem:[#allocation2 + $0x28] sm:$0xff]   ;;  %v133_v33 = vld [vmem:[%s2178_s2 + $0x60] sm:$0xff] }
  0x3c   :  { %1455 = vmatpush3.bf16.msra.mxu0 %v1910_v3  ;;  %1485 = vmatpush3.bf16.msra.mxu1 %v1671_v17  ;;  %v2003_v32 = vld [vmem:[%s2176_s0 + $0x18] sm:$0xff]   ;;  %v134_v34 = vld [vmem:[%s2178_s2 + $0x68] sm:$0xff]  ;;  %v2014_v35 = vld [vmem:[%s2176_s0 + $0x20] sm:$0xff]  }
  0x3d   :  { %1456 = vmatprep.subr.bf16.mxu0 %v1915_v4  ;;  %1486 = vmatprep.subr.bf16.mxu1 %v1673_v20  ;;  %v1678_v36 = vld [vmem:[#allocation2 + $0x20] sm:$0xff]   ;;  %v1679_v37 = vld [vmem:[#allocation5 + $0x10] sm:$0xff]   ;;  %v136_v39 = vld [vmem:[%s2178_s2 + $0x78] sm:$0xff] }
  0x3e   :  { %352 = vperm.xlu0 %1652, %v125_v14   ;;  %357 = vperm.xlu1 %1653, %v126_v15   ;;  %v135_v38 = vld [vmem:[%s2178_s2 + $0x70] sm:$0xff]  ;;  %v1681_v40 = vld [vmem:[#allocation5 + $0x8] sm:$0xff]   ;;  %v1680_v41 = vld [vmem:[#allocation2 + $0x18] sm:$0xff]  }
  0x3f   :  { %v2027_v42 = vld [vmem:[%s2176_s0 + $0x28] sm:$0xff]   ;;  %v2032_v43 = vld [vmem:[%s2176_s0 + $0x30] sm:$0xff]   ;;  %v2039_v44 = vld [vmem:[%s2176_s0 + $0x38] sm:$0xff]  }
  0x40   :  { %1457 = vmatpush3.bf16.msra.mxu0 %v1915_v4  ;;  %1487 = vmatpush3.bf16.msra.mxu1 %v1673_v20  ;;  %v1682_v45 = vld [vmem:[#allocation2 + $0x10] sm:$0xff]   ;;  %v1683_v46 = vld [vmem:[#allocation5] sm:$0xff]   ;;  %v1684_v47 = vld [vmem:[#allocation2 + $0x8] sm:$0xff]  }
  0x41   :  { %1458 = vmatprep.subr.bf16.mxu0 %v1933_v7  ;;  %1488 = vmatprep.subr.bf16.mxu1 %v1675_v29  ;;  %v1685_v48 = vld [vmem:[#allocation2] sm:$0xff]   ;;  %v1686_v49 = vld [vmem:[#allocation8 + $0x38] sm:$0xff]   ;;  %v1688_v12 = vld [vmem:[#allocation8 + $0x28] sm:$0xff]  }
  0x42   :  { %362 = vperm.xlu0 %1652, %v127_v18   ;;  %367 = vperm.xlu1 %1653, %v128_v19  }
  0x44   :  { %1459 = vmatpush3.bf16.msra.mxu0 %v1933_v7  ;;  %1489 = vmatpush3.bf16.msra.mxu1 %v1675_v29 }
  0x45   :  { %1460 = vmatprep.subr.bf16.mxu0 %v1940_v8  ;;  %1490 = vmatprep.subr.bf16.mxu1 %v1677_v30 }
  0x46   :  { %372 = vperm.xlu0 %1652, %v129_v24   ;;  %377 = vperm.xlu1 %1653, %v130_v25  }
  0x48   :  { %1461 = vmatpush3.bf16.msra.mxu0 %v1940_v8  ;;  %1491 = vmatpush3.bf16.msra.mxu1 %v1677_v30 }
  0x49   :  { %1462 = vmatprep.subr.bf16.mxu0 %v1959_v13  ;;  %1492 = vmatprep.subr.bf16.mxu1 %v1679_v37 }
  0x4a   :  { %382 = vperm.xlu0 %1652, %v131_v27   ;;  %387 = vperm.xlu1 %1653, %v132_v28  }
  0x4c   :  { %1463 = vmatpush3.bf16.msra.mxu0 %v1959_v13  ;;  %1493 = vmatpush3.bf16.msra.mxu1 %v1679_v37 }
  0x4d   :  { %1464 = vmatprep.subr.bf16.mxu0 %v1661_v5  ;;  %1494 = vmatprep.subr.bf16.mxu1 %v1681_v40 }
  0x4e   :  { %392 = vperm.xlu0 %1652, %v133_v33   ;;  %397 = vperm.xlu1 %1653, %v134_v34  }
  0x50   :  { %1465 = vmatpush3.bf16.msra.mxu0 %v1661_v5  ;;  %1495 = vmatpush3.bf16.msra.mxu1 %v1681_v40 }
  0x51   :  { %1514 = vmatprep.subr.bf16.mxu0 %v1672_v22  ;;  %1496 = vmatprep.subr.bf16.mxu1 %v1683_v46 }
  0x52   :  { %402 = vperm.xlu0 %1652, %v135_v38   ;;  %407 = vperm.xlu1 %1653, %v136_v39  }
  0x53   :  { %1467 = vmatmul.mubr.bf16.vlgmr.msra.gmra.mxu0 %v1979_v21 }
  0x54   :  { %1470 = vmatprep.mubr.bf16.mxu0 %v1984_v23  ;;  %1515 = vmatpush3.bf16.msra.mxu0 %v1672_v22  ;;  %v1689_v22 = vld [vmem:[#allocation8 + $0x20] sm:$0xff]  }
  0x55   :  { %1516 = vmatprep.subr.bf16.mxu0 %v1674_v26  ;;  %1497 = vmatpush3.bf16.msra.mxu1 %v1683_v46 }
  0x58   :  { %1517 = vmatpush3.bf16.msra.mxu0 %v1674_v26  ;;  %1499 = vmatmul.mubr.bf16.vlgmr.msra.gmra.mxu1 %v1959_v13 }
  0x59   :  { %1518 = vmatprep.subr.bf16.mxu0 %v1676_v31  ;;  %1502 = vmatprep.mubr.bf16.mxu1 %v1940_v8 }
  0x5b   :  { %1471 = vmatmul.mubr.bf16.gmra.mxu0 %v2003_v32 }
  0x5c   :  { %1474 = vmatprep.mubr.bf16.mxu0 %v2014_v35  ;;  %1519 = vmatpush3.bf16.msra.mxu0 %v1676_v31 }
  0x5d   :  { %1520 = vmatprep.subr.bf16.mxu0 %v1678_v36 }
  0x60   :  { %1521 = vmatpush3.bf16.msra.mxu0 %v1678_v36  ;;  %1503 = vmatmul.mubr.bf16.gmra.mxu1 %v1933_v7 }
  0x61   :  { %1522 = vmatprep.subr.bf16.mxu0 %v1680_v41  ;;  %1506 = vmatprep.mubr.bf16.mxu1 %v1915_v4 }
  0x63   :  { %1475 = vmatmul.mubr.bf16.gmra.mxu0 %v2027_v42 }
  0x64   :  { %1478 = vmatprep.mubr.bf16.mxu0 %v2032_v43  ;;  %1523 = vmatpush3.bf16.msra.mxu0 %v1680_v41 }
  0x65   :  { %1524 = vmatprep.subr.bf16.mxu0 %v1682_v45 }
  0x68   :  { %1525 = vmatpush3.bf16.msra.mxu0 %v1682_v45  ;;  %1507 = vmatmul.mubr.bf16.gmra.mxu1 %v1910_v3 }
  0x69   :  { %1526 = vmatprep.subr.bf16.mxu0 %v1684_v47  ;;  %1510 = vmatprep.mubr.bf16.mxu1 %v1902_v2 }
  0x6b   :  { %1479 = vmatmul.mubr.bf16.gmra.mxu0 %v2039_v44 }
  0x6c   :  { %1527 = vmatpush3.bf16.msra.mxu0 %v1684_v47 }
  0x6d   :  { %1528 = vmatprep.subr.bf16.mxu0 %v1685_v48 }
  0x70   :  { %1529 = vmatpush3.bf16.msra.mxu0 %v1685_v48  ;;  %1511 = vmatmul.mubr.bf16.gmra.mxu1 %v1897_v1 }
  0x71   :  { %1562 = vmatprep.mubr.bf16.mxu1 %v1925_v6  ;;  %1578 = vmatprep.subr.bf16.mxu0 %v1686_v49  ;;  %v1687_v6 = vld [vmem:[#allocation8 + $0x30] sm:$0xff]  }
  0xb1   :  { %v2050_v50 = vpop.permute.xlu1 %342  ;;  %v2052_v51 = vpop.permute.xlu0 %332 }
  0xb5   :  { %v2054_v52 = vpop.permute.xlu1 %347  ;;  %v2056_v53 = vpop.permute.xlu0 %337 }
  0xb9   :  { %v2058_v54 = vpop.permute.xlu1 %357  ;;  %v2060_v56 = vpop.permute.xlu0 %352 }
  0xbd   :  { %v2062_v59 = vpop.permute.xlu1 %367  ;;  %v2065_v62 = vpop.permute.xlu0 %362 }
  0xc1   :  { %v2070_v7 = vpop.permute.xlu1 %377  ;;  %v2072_v9 = vpop.permute.xlu0 %372 }
  0xc5   :  { %v2078_v17 = vpop.permute.xlu1 %387  ;;  %v2080_v24 = vpop.permute.xlu0 %382 }
  0xc9   :  { %v2083_v28 = vpop.permute.xlu1 %397  ;;  %v2088_v34 = vpop.permute.xlu0 %392 }
  0xcd   :  { %v2090_v40 = vpop.permute.xlu1 %407  ;;  %v2093_v46 = vpop.permute.xlu0 %402 }
 0x113   :  { %v1468_v55 = vpop.f32.mrf.mxu0 }
 0x114   :  { %v412_v1 = vmul.f32 %v1468_v55, %v2050_v50 }
 0x115   :  { %v267_v57 = vpop.f32.mrf.mxu0 }
 0x116   :  { %v410_v63 = vmul.f32 %v2052_v51, %v267_v57 }
 0x117   :  { %v1469_v58 = vpop.f32.mrf.mxu0 }
 0x118   :  { %v413_v60 = vmul.f32 %v1469_v58, %v2054_v52  ;;  %v1690_v58 = vld [vmem:[#allocation8 + $0x18] sm:$0xff]  }
 0x119   :  { %v270_v61 = vpop.f32.mrf.mxu0 }
 0x11a   :  { %v411_v0 = vmul.f32 %v2056_v53, %v270_v61  ;;  %v427_v4 = vpack.c.bf16 %v413_v60, %v412_v1  ;;  %v1691_v60 = vld [vmem:[#allocation8 + $0x10] sm:$0xff]   ;;  %v1692_v61 = vld [vmem:[#allocation8 + $0x8] sm:$0xff]  }
 0x11b   :  { %v1472_v2 = vpop.f32.mrf.mxu0 }
 0x11c   :  { %v426_v3 = vpack.c.bf16 %v411_v0, %v410_v63  ;;  %v416_v15 = vmul.f32 %v1472_v2, %v2065_v62  ;;  %v1693_v63 = vld [vmem:[#allocation8] sm:$0xff]   ;;  %v1500_v0 = vpop.f32.mrf.mxu1 }
 0x11d   :  { %v283_v5 = vpop.f32.mrf.mxu0 }
 0x11e   :  { %1530 = vmatprep.mubr.bf16.mxu0 %v426_v3  ;;  %v414_v13 = vmul.f32 %v2060_v56, %v283_v5  ;;  %v548_v1 = vpop.f32.mrf.mxu1 }
 0x11f   :  { %v1473_v8 = vpop.f32.mrf.mxu0  ;;  %1531 = vmatmul.mubr.bf16.vlgmr.msra.gmra.mxu0 %v427_v4 }
 0x120   :  { %1579 = vmatpush3.bf16.msra.mxu0 %v1686_v49  ;;  %v417_v10 = vmul.f32 %v1473_v8, %v2062_v59  ;;  %v1501_v2 = vpop.f32.mrf.mxu1 }
 0x121   :  { %v286_v11 = vpop.f32.mrf.mxu0  ;;  %1580 = vmatprep.subr.bf16.mxu0 %v1687_v6 }
 0x122   :  { %v415_v14 = vmul.f32 %v2058_v54, %v286_v11  ;;  %v429_v19 = vpack.c.bf16 %v417_v10, %v416_v15  ;;  %v551_v3 = vpop.f32.mrf.mxu1 }
 0x123   :  { %v1476_v16 = vpop.f32.mrf.mxu0 }
 0x124   :  { %v428_v18 = vpack.c.bf16 %v415_v14, %v414_v13  ;;  %1581 = vmatpush3.bf16.msra.mxu0 %v1687_v6  ;;  %v420_v31 = vmul.f32 %v1476_v16, %v2080_v24  ;;  %v1504_v4 = vpop.f32.mrf.mxu1  ;;  %v2101_v16 = vld [vmem:[%s2181_s5] ss:$0 sm:$0xff] }
 0x125   :  { %v299_v20 = vpop.f32.mrf.mxu0  ;;  %1582 = vmatprep.subr.bf16.mxu0 %v1688_v12 }
 0x126   :  { %1534 = vmatprep.mubr.bf16.mxu0 %v428_v18  ;;  %v418_v29 = vmul.f32 %v2072_v9, %v299_v20  ;;  %v564_v5 = vpop.f32.mrf.mxu1 }
 0x127   :  { %v1477_v25 = vpop.f32.mrf.mxu0  ;;  %1535 = vmatmul.mubr.bf16.gmra.mxu0 %v429_v19 }
 0x128   :  { %1583 = vmatpush3.bf16.msra.mxu0 %v1688_v12  ;;  %v421_v26 = vmul.f32 %v1477_v25, %v2078_v17  ;;  %v1505_v6 = vpop.f32.mrf.mxu1 }
 0x129   :  { %v302_v27 = vpop.f32.mrf.mxu0  ;;  %1584 = vmatprep.subr.bf16.mxu0 %v1689_v22 }
 0x12a   :  { %v419_v30 = vmul.f32 %v2070_v7, %v302_v27  ;;  %v431_v37 = vpack.c.bf16 %v421_v26, %v420_v31  ;;  %v567_v8 = vpop.f32.mrf.mxu1 }
 0x12b   :  { %v1480_v33 = vpop.f32.mrf.mxu0 }
 0x12c   :  { %v430_v36 = vpack.c.bf16 %v419_v30, %v418_v29  ;;  %1585 = vmatpush3.bf16.msra.mxu0 %v1689_v22  ;;  %v424_v49 = vmul.f32 %v1480_v33, %v2093_v46  ;;  %v1508_v12 = vpop.f32.mrf.mxu1 }
 0x12d   :  { %v315_v38 = vpop.f32.mrf.mxu0  ;;  %1586 = vmatprep.subr.bf16.mxu0 %v1690_v58 }
 0x12e   :  { %1538 = vmatprep.mubr.bf16.mxu0 %v430_v36  ;;  %v422_v47 = vmul.f32 %v2088_v34, %v315_v38  ;;  %v580_v20 = vpop.f32.mrf.mxu1 }
 0x12f   :  { %v1481_v39 = vpop.f32.mrf.mxu0  ;;  %1539 = vmatmul.mubr.bf16.gmra.mxu0 %v431_v37 }
 0x130   :  { %v425_v41 = vmul.f32 %v1481_v39, %v2090_v40  ;;  %1587 = vmatpush3.bf16.msra.mxu0 %v1690_v58  ;;  %v1509_v36 = vpop.f32.mrf.mxu1 }
 0x131   :  { %v318_v45 = vpop.f32.mrf.mxu0  ;;  %1588 = vmatprep.subr.bf16.mxu0 %v1691_v60 }
 0x132   :  { %v423_v48 = vmul.f32 %v2083_v28, %v318_v45  ;;  %v433_v57 = vpack.c.bf16 %v425_v41, %v424_v49  ;;  %v583_v58 = vpop.f32.mrf.mxu1 }
 0x134   :  { %v432_v55 = vpack.c.bf16 %v423_v48, %v422_v47  ;;  %1589 = vmatpush3.bf16.msra.mxu0 %v1691_v60 }
 0x135   :  { %1590 = vmatprep.subr.bf16.mxu0 %v1692_v61 }
 0x136   :  { %1542 = vmatprep.mubr.bf16.mxu0 %v432_v55 }
 0x137   :  { %1543 = vmatmul.mubr.bf16.gmra.mxu0 %v433_v57 }
 0x138   :  { %1591 = vmatpush3.bf16.msra.mxu0 %v1692_v61 }
 0x139   :  { %1592 = vmatprep.subr.bf16.mxu0 %v1693_v63 }
 0x13c   :  { %1593 = vmatpush3.bf16.msra.mxu0 %v1693_v63 }
 0x1df   :  { %v1532_v10 = vpop.f32.mrf.mxu0 }
 0x1e0   :  { %v702_v14 = vadd.f32 %v1532_v10, %v1500_v0 }
 0x1e1   :  { %v693_v11 = vpop.f32.mrf.mxu0 }
 0x1e2   :  { %v694_v13 = vadd.f32 %v693_v11, %v548_v1  ;;  %v765_v27 = vadd.f32 %v2101_v16, %v702_v14 }
 0x1e3   :  { %v1533_v15 = vpop.f32.mrf.mxu0 }
 0x1e4   :  { %v705_v18 = vadd.f32 %v1533_v15, %v1501_v2  ;;  %v763_v22 = vadd.f32 %v2101_v16, %v694_v13  ;;  %v781_v41 = vmax.f32 %v765_v27, 0.0 }
 0x1e5   :  { %v696_v19 = vpop.f32.mrf.mxu0 }
 0x1e6   :  { %v766_v25 = vadd.f32 %v2101_v16, %v705_v18  ;;  %v697_v26 = vadd.f32 %v696_v19, %v551_v3  ;;  %v779_v37 = vmax.f32 %v763_v22, 0.0 }
 0x1e7   :  { %v1536_v29 = vpop.f32.mrf.mxu0 }
 0x1e8   :  { %v764_v30 = vadd.f32 %v2101_v16, %v697_v26  ;;  %v782_v31 = vmax.f32 %v766_v25, 0.0  ;;  %v718_v45 = vadd.f32 %v1536_v29, %v1504_v4  ;;  %v1512_v4 = vpop.f32.mrf.mxu1 }
 0x1e9   :  { %v709_v33 = vpop.f32.mrf.mxu0 }
 0x1ea   :  { %v780_v38 = vmax.f32 %v764_v30, 0.0  ;;  %v710_v39 = vadd.f32 %v709_v33, %v564_v5  ;;  %v2109_v55 = vpack.c.bf16 %v782_v31, %v781_v41  ;;  %v769_v0 = vadd.f32 %v2101_v16, %v718_v45  ;;  %v596_v19 = vpop.f32.mrf.mxu1 }
 0x1eb   :  { %v1537_v47 = vpop.f32.mrf.mxu0 }
 0x1ec   :  { %v721_v48 = vadd.f32 %v1537_v47, %v1505_v6  ;;  %v2107_v49 = vpack.c.bf16 %v780_v38, %v779_v37  ;;  %v767_v60 = vadd.f32 %v2101_v16, %v710_v39  ;;  %v785_v13 = vmax.f32 %v769_v0, 0.0  ;;  %v1513_v37 = vpop.f32.mrf.mxu1 }
 0x1ed   :  { %v712_v57 = vpop.f32.mrf.mxu0 }
 0x1ee   :  { %v770_v61 = vadd.f32 %v2101_v16, %v721_v48  ;;  %v713_v63 = vadd.f32 %v712_v57, %v567_v8  ;;  %1594 = vmatprep.mubr.bf16.mxu0 %v2107_v49  ;;  %v783_v6 = vmax.f32 %v767_v60, 0.0  ;;  %v599_v60 = vpop.f32.mrf.mxu1 }
 0x1ef   :  { %v1540_v1 = vpop.f32.mrf.mxu0  ;;  %1595 = vmatmul.mubr.bf16.vlgmr.msra.gmra.mxu0 %v2109_v55 }
 0x1f0   :  { %v768_v2 = vadd.f32 %v2101_v16, %v713_v63  ;;  %v786_v3 = vmax.f32 %v770_v61, 0.0  ;;  %v734_v14 = vadd.f32 %v1540_v1, %v1508_v12 }
 0x1f1   :  { %v725_v5 = vpop.f32.mrf.mxu0 }
 0x1f2   :  { %v784_v10 = vmax.f32 %v768_v2, 0.0  ;;  %v726_v11 = vadd.f32 %v725_v5, %v580_v20  ;;  %v798_v25 = vpack.c.bf16 %v786_v3, %v785_v13  ;;  %v773_v30 = vadd.f32 %v2101_v16, %v734_v14 }
 0x1f3   :  { %v1541_v15 = vpop.f32.mrf.mxu0 }
 0x1f4   :  { %v737_v18 = vadd.f32 %v1541_v15, %v1509_v36  ;;  %v797_v8 = vpack.c.bf16 %v784_v10, %v783_v6  ;;  %v771_v26 = vadd.f32 %v2101_v16, %v726_v11  ;;  %v789_v45 = vmax.f32 %v773_v30, 0.0 }
 0x1f5   :  { %v728_v22 = vpop.f32.mrf.mxu0 }
 0x1f6   :  { %v774_v27 = vadd.f32 %v2101_v16, %v737_v18  ;;  %v729_v29 = vadd.f32 %v728_v22, %v583_v58  ;;  %1598 = vmatprep.mubr.bf16.mxu0 %v797_v8  ;;  %v787_v38 = vmax.f32 %v771_v26, 0.0 }
 0x1f7   :  { %v1544_v31 = vpop.f32.mrf.mxu0  ;;  %1599 = vmatmul.mubr.bf16.gmra.mxu0 %v798_v25 }
 0x1f8   :  { %v772_v20 = vadd.f32 %v2101_v16, %v729_v29  ;;  %v750_v33 = vadd.f32 %v1544_v31, %v1512_v4  ;;  %v790_v12 = vmax.f32 %v774_v27, 0.0 }
 0x1f9   :  { %v741_v36 = vpop.f32.mrf.mxu0 }
 0x1fa   :  { %v788_v39 = vmax.f32 %v772_v20, 0.0  ;;  %v742_v41 = vadd.f32 %v741_v36, %v596_v19  ;;  %v777_v48 = vadd.f32 %v2101_v16, %v750_v33  ;;  %v800_v63 = vpack.c.bf16 %v790_v12, %v789_v45 }
 0x1fb   :  { %v1545_v47 = vpop.f32.mrf.mxu0 }
 0x1fc   :  { %v753_v57 = vadd.f32 %v1545_v47, %v1513_v37  ;;  %v799_v58 = vpack.c.bf16 %v788_v39, %v787_v38  ;;  %v775_v0 = vadd.f32 %v2101_v16, %v742_v41  ;;  %v793_v3 = vmax.f32 %v777_v48, 0.0 }
 0x1fd   :  { %v744_v61 = vpop.f32.mrf.mxu0 }
 0x1fe   :  { %v778_v1 = vadd.f32 %v2101_v16, %v753_v57  ;;  %v745_v2 = vadd.f32 %v744_v61, %v599_v60  ;;  %1602 = vmatprep.mubr.bf16.mxu0 %v799_v58  ;;  %v791_v6 = vmax.f32 %v775_v0, 0.0 }
 0x1ff   :  { %1603 = vmatmul.mubr.bf16.gmra.mxu0 %v800_v63 }
 0x200   :  { %v794_v4 = vmax.f32 %v778_v1, 0.0  ;;  %v776_v5 = vadd.f32 %v2101_v16, %v745_v2  ;;  %v1694_v16 = vld [vmem:[#allocation7 + $0x38] sm:$0xff]  }
 0x202   :  { %v792_v10 = vmax.f32 %v776_v5, 0.0  ;;  %v802_v11 = vpack.c.bf16 %v794_v4, %v793_v3 }
 0x204   :  { %1546 = vmatprep.subr.bf16.mxu1 %v802_v11  ;;  %v801_v13 = vpack.c.bf16 %v792_v10, %v791_v6 }
 0x205   :  { %1547 = vmatpush3.bf16.msra.mxu1 %v802_v11 }
 0x206   :  { %1548 = vmatprep.subr.bf16.mxu1 %v801_v13  ;;  %1606 = vmatprep.mubr.bf16.mxu0 %v801_v13 }
 0x207   :  { %1607 = vmatmul.mubr.bf16.gmra.mxu0 %v802_v11 }
 0x209   :  { %1549 = vmatpush3.bf16.msra.mxu1 %v801_v13 }
 0x20a   :  { %1550 = vmatprep.subr.bf16.mxu1 %v800_v63 }
 0x20d   :  { %1551 = vmatpush3.bf16.msra.mxu1 %v800_v63 }
 0x20e   :  { %1552 = vmatprep.subr.bf16.mxu1 %v799_v58 }
 0x211   :  { %1553 = vmatpush3.bf16.msra.mxu1 %v799_v58 }
 0x212   :  { %1554 = vmatprep.subr.bf16.mxu1 %v798_v25 }
 0x215   :  { %1555 = vmatpush3.bf16.msra.mxu1 %v798_v25 }
 0x216   :  { %1556 = vmatprep.subr.bf16.mxu1 %v797_v8 }
 0x219   :  { %1557 = vmatpush3.bf16.msra.mxu1 %v797_v8 }
 0x21a   :  { %1558 = vmatprep.subr.bf16.mxu1 %v2109_v55 }
 0x21d   :  { %1559 = vmatpush3.bf16.msra.mxu1 %v2109_v55  ;;  %v1695_v55 = vld [vmem:[#allocation7 + $0x30] sm:$0xff]  }
 0x21e   :  { %1560 = vmatprep.subr.bf16.mxu1 %v2107_v49 }
 0x221   :  { %1561 = vmatpush3.bf16.msra.mxu1 %v2107_v49  ;;  %v1696_v49 = vld [vmem:[#allocation7 + $0x28] sm:$0xff]  }
 0x222   :  { %1610 = vmatprep.subr.bf16.mxu1 %v1694_v16 }
 0x224   :  { %1563 = vmatmul.mubr.bf16.vlgmr.msra.gmra.mxu1 %v1979_v21  ;;  %v1697_v21 = vld [vmem:[#allocation7 + $0x20] sm:$0xff]  }
 0x225   :  { %1566 = vmatprep.mubr.bf16.mxu1 %v1984_v23  ;;  %1611 = vmatpush3.bf16.msra.mxu1 %v1694_v16  ;;  %v1698_v23 = vld [vmem:[#allocation7 + $0x18] sm:$0xff]  }
 0x226   :  { %1612 = vmatprep.subr.bf16.mxu1 %v1695_v55 }
 0x229   :  { %1613 = vmatpush3.bf16.msra.mxu1 %v1695_v55 }
 0x22a   :  { %1614 = vmatprep.subr.bf16.mxu1 %v1696_v49 }
 0x22c   :  { %1567 = vmatmul.mubr.bf16.gmra.mxu1 %v2003_v32  ;;  %v1699_v32 = vld [vmem:[#allocation7 + $0x10] sm:$0xff]  }
 0x22d   :  { %1570 = vmatprep.mubr.bf16.mxu1 %v2014_v35  ;;  %1615 = vmatpush3.bf16.msra.mxu1 %v1696_v49  ;;  %v1700_v35 = vld [vmem:[#allocation7 + $0x8] sm:$0xff]  }
 0x22e   :  { %1616 = vmatprep.subr.bf16.mxu1 %v1697_v21 }
 0x231   :  { %1617 = vmatpush3.bf16.msra.mxu1 %v1697_v21 }
 0x232   :  { %1618 = vmatprep.subr.bf16.mxu1 %v1698_v23 }
 0x234   :  { %1571 = vmatmul.mubr.bf16.gmra.mxu1 %v2027_v42  ;;  %v1701_v42 = vld [vmem:[#allocation7] sm:$0xff]  }
 0x235   :  { %1574 = vmatprep.mubr.bf16.mxu1 %v2032_v43  ;;  %1619 = vmatpush3.bf16.msra.mxu1 %v1698_v23 }
 0x236   :  { %1620 = vmatprep.subr.bf16.mxu1 %v1699_v32 }
 0x239   :  { %1621 = vmatpush3.bf16.msra.mxu1 %v1699_v32 }
 0x23a   :  { %1622 = vmatprep.subr.bf16.mxu1 %v1700_v35 }
 0x23c   :  { %1575 = vmatmul.mubr.bf16.gmra.mxu1 %v2039_v44 }
 0x23d   :  { %1623 = vmatpush3.bf16.msra.mxu1 %v1700_v35 }
 0x23e   :  { %1624 = vmatprep.subr.bf16.mxu1 %v1701_v42 }
 0x241   :  { %1625 = vmatpush3.bf16.msra.mxu1 %v1701_v42 }
 0x2e4   :  { %v1564_v43 = vpop.f32.mrf.mxu1 }
 0x2e5   :  { %v902_v22 = vmul.f32 %v1564_v43, %v2050_v50 }
 0x2e6   :  { %v837_v44 = vpop.f32.mrf.mxu1 }
 0x2e7   :  { %v900_v8 = vmul.f32 %v837_v44, %v2052_v51 }
 0x2e8   :  { %v1565_v14 = vpop.f32.mrf.mxu1 }
 0x2e9   :  { %v903_v15 = vmul.f32 %v1565_v14, %v2054_v52 }
 0x2ea   :  { %v840_v18 = vpop.f32.mrf.mxu1 }
 0x2eb   :  { %v901_v19 = vmul.f32 %v840_v18, %v2056_v53  ;;  %v917_v27 = vpack.c.bf16 %v903_v15, %v902_v22 }
 0x2ec   :  { %v1568_v25 = vpop.f32.mrf.mxu1 }
 0x2ed   :  { %v916_v26 = vpack.c.bf16 %v901_v19, %v900_v8  ;;  %v906_v51 = vmul.f32 %v1568_v25, %v2065_v62 }
 0x2ee   :  { %v853_v29 = vpop.f32.mrf.mxu1 }
 0x2ef   :  { %1626 = vmatprep.mubr.bf16.mxu1 %v916_v26  ;;  %v904_v33 = vmul.f32 %v853_v29, %v2060_v56 }
 0x2f0   :  { %v1569_v30 = vpop.f32.mrf.mxu1  ;;  %1627 = vmatmul.mubr.bf16.vlgmr.msra.gmra.mxu1 %v917_v27 }
 0x2f1   :  { %v907_v31 = vmul.f32 %v1569_v30, %v2062_v59 }
 0x2f2   :  { %v856_v20 = vpop.f32.mrf.mxu1 }
 0x2f3   :  { %v905_v52 = vmul.f32 %v856_v20, %v2058_v54  ;;  %v919_v37 = vpack.c.bf16 %v907_v31, %v906_v51 }
 0x2f4   :  { %v1572_v12 = vpop.f32.mrf.mxu1 }
 0x2f5   :  { %v918_v53 = vpack.c.bf16 %v905_v52, %v904_v33  ;;  %v910_v56 = vmul.f32 %v1572_v12, %v2080_v24  ;;  %v1596_v24 = vpop.f32.mrf.mxu0 }
 0x2f6   :  { %v869_v50 = vpop.f32.mrf.mxu1 }
 0x2f7   :  { %1630 = vmatprep.mubr.bf16.mxu1 %v918_v53  ;;  %v908_v41 = vmul.f32 %v869_v50, %v2072_v9  ;;  %v1038_v63 = vpop.f32.mrf.mxu0 }
 0x2f8   :  { %v1573_v36 = vpop.f32.mrf.mxu1  ;;  %1631 = vmatmul.mubr.bf16.gmra.mxu1 %v919_v37 }
 0x2f9   :  { %v911_v38 = vmul.f32 %v1573_v36, %v2078_v17  ;;  %v1597_v0 = vpop.f32.mrf.mxu0 }
 0x2fa   :  { %v872_v39 = vpop.f32.mrf.mxu1 }
 0x2fb   :  { %v909_v59 = vmul.f32 %v872_v39, %v2070_v7  ;;  %v921_v47 = vpack.c.bf16 %v911_v38, %v910_v56  ;;  %v1041_v1 = vpop.f32.mrf.mxu0 }
 0x2fc   :  { %v1576_v45 = vpop.f32.mrf.mxu1 }
 0x2fd   :  { %v920_v54 = vpack.c.bf16 %v909_v59, %v908_v41  ;;  %v914_v9 = vmul.f32 %v1576_v45, %v2093_v46  ;;  %v1600_v2 = vpop.f32.mrf.mxu0 }
 0x2fe   :  { %v885_v62 = vpop.f32.mrf.mxu1 }
 0x2ff   :  { %1634 = vmatprep.mubr.bf16.mxu1 %v920_v54  ;;  %v912_v60 = vmul.f32 %v885_v62, %v2088_v34  ;;  %v1054_v3 = vpop.f32.mrf.mxu0  ;;  %v2155_v34 = vld [vmem:[%s2184_s8] ss:$0 sm:$0xff]  ;;  %s1817_s8 = smov [#allocation10]  }
 0x300   :  { %v1577_v48 = vpop.f32.mrf.mxu1  ;;  %1635 = vmatmul.mubr.bf16.gmra.mxu1 %v921_v47  ;;  %s1290_s19 = sshll.u32 %s1817_s8, 4  ;;  %s1291_s19 = int_to_ptr.vmem [resolvable:$true] %s1290_s19 }
 0x301   :  { %v915_v57 = vmul.f32 %v1577_v48, %v2090_v40  ;;  %v1601_v4 = vpop.f32.mrf.mxu0  ;;  %s1782_s20 = scalar_lea.vmem %s1291_s19, 2048  ;;  %p1787_p7 = scmp.lt.s32.totalorder %s1291_s19, %s1291_s19 }
 0x302   :  { %v888_v58 = vpop.f32.mrf.mxu1  ;;  %p1783_p6 = scmp.ne.s32.totalorder %s1291_s19, %s1782_s20  ;;  %p1788_p8 = scmp.lt.s32.totalorder %s1782_s20, %s1782_s20 }
 0x303   :  { %v913_v17 = vmul.f32 %v888_v58, %v2083_v28  ;;  %v923_v7 = vpack.c.bf16 %v915_v57, %v914_v9  ;;  %v1057_v5 = vpop.f32.mrf.mxu0 }
 0x304   :  { %p1789_p9 = por %p1788_p8, %p1787_p7 }
 0x305   :  { %v922_v61 = vpack.c.bf16 %v913_v17, %v912_v60  ;;  %v1604_v46 = vpop.f32.mrf.mxu0 }
 0x306   :  { %p1790_p10 = pnand %p1789_p9, %p1783_p6 }
 0x307   :  { %1638 = vmatprep.mubr.bf16.mxu1 %v922_v61  ;;  %v1070_v49 = vpop.f32.mrf.mxu0 }
 0x308   :  { %1639 = vmatmul.mubr.bf16.gmra.mxu1 %v923_v7 }
 0x309   :  { %v1605_v44 = vpop.f32.mrf.mxu0 }
 0x30b   :  { %v1073_v25 = vpop.f32.mrf.mxu0 }
 0x30d   :  { %v1608_v33 = vpop.f32.mrf.mxu0 }
 0x30f   :  { %v1086_v36 = vpop.f32.mrf.mxu0 }
 0x311   :  { %v1609_v54 = vpop.f32.mrf.mxu0 }
 0x313   :  { %v1089_v17 = vpop.f32.mrf.mxu0 }
 0x3b0   :  { %v1628_v40 = vpop.f32.mrf.mxu1 }
 0x3b1   :  { %v1192_v28 = vadd.f32 %v1628_v40, %v1596_v24 }
 0x3b2   :  { %v1183_v6 = vpop.f32.mrf.mxu1 }
 0x3b3   :  { %v1255_v10 = vadd.f32 %v2155_v34, %v1192_v28  ;;  %v1184_v11 = vadd.f32 %v1183_v6, %v1038_v63 }
 0x3b4   :  { %v1629_v13 = vpop.f32.mrf.mxu1 }
 0x3b5   :  { %1271 = vst [vmem:[#allocation10 + $0x10] sm:$0xff] %v1255_v10  ;;  %v1253_v16 = vadd.f32 %v2155_v34, %v1184_v11  ;;  %v1195_v55 = vadd.f32 %v1629_v13, %v1597_v0 }
 0x3b6   :  { %v1186_v21 = vpop.f32.mrf.mxu1 }
 0x3b7   :  { %1269 = vst [vmem:[#allocation10] sm:$0xff] %v1253_v16  ;;  %v1256_v23 = vadd.f32 %v2155_v34, %v1195_v55  ;;  %v1187_v32 = vadd.f32 %v1186_v21, %v1041_v1 }
 0x3b8   :  { %v1632_v35 = vpop.f32.mrf.mxu1 }
 0x3b9   :  { %1272 = vst [vmem:[#allocation10 + $0x18] sm:$0xff] %v1256_v23  ;;  %v1254_v42 = vadd.f32 %v2155_v34, %v1187_v32  ;;  %v1208_v43 = vadd.f32 %v1632_v35, %v1600_v2 }
 0x3ba   :  { %v1199_v14 = vpop.f32.mrf.mxu1 }
 0x3bb   :  { %1270 = vst [vmem:[#allocation10 + $0x8] sm:$0xff] %v1254_v42  ;;  %v1259_v15 = vadd.f32 %v2155_v34, %v1208_v43  ;;  %v1200_v18 = vadd.f32 %v1199_v14, %v1054_v3 }
 0x3bc   :  { %v1633_v8 = vpop.f32.mrf.mxu1 }
 0x3bd   :  { %1275 = vst [vmem:[#allocation10 + $0x30] sm:$0xff] %v1259_v15  ;;  %v1257_v19 = vadd.f32 %v2155_v34, %v1200_v18  ;;  %v1211_v22 = vadd.f32 %v1633_v8, %v1601_v4 }
 0x3be   :  { %v1202_v26 = vpop.f32.mrf.mxu1 }
 0x3bf   :  { %1273 = vst [vmem:[#allocation10 + $0x20] sm:$0xff] %v1257_v19  ;;  %v1260_v27 = vadd.f32 %v2155_v34, %v1211_v22  ;;  %v1203_v29 = vadd.f32 %v1202_v26, %v1057_v5 }
 0x3c0   :  { %v1636_v30 = vpop.f32.mrf.mxu1 }
 0x3c1   :  { %1276 = vst [vmem:[#allocation10 + $0x38] sm:$0xff] %v1260_v27  ;;  %v1258_v31 = vadd.f32 %v2155_v34, %v1203_v29  ;;  %v1224_v20 = vadd.f32 %v1636_v30, %v1604_v46 }
 0x3c2   :  { %v1215_v52 = vpop.f32.mrf.mxu1 }
 0x3c3   :  { %1274 = vst [vmem:[#allocation10 + $0x28] sm:$0xff] %v1258_v31  ;;  %v1263_v51 = vadd.f32 %v2155_v34, %v1224_v20  ;;  %v1216_v12 = vadd.f32 %v1215_v52, %v1070_v49 }
 0x3c4   :  { %v1637_v53 = vpop.f32.mrf.mxu1 }
 0x3c5   :  { %1279 = vst [vmem:[#allocation10 + $0x50] sm:$0xff] %v1263_v51  ;;  %v1261_v37 = vadd.f32 %v2155_v34, %v1216_v12  ;;  %v1227_v50 = vadd.f32 %v1637_v53, %v1605_v44 }
 0x3c6   :  { %v1218_v38 = vpop.f32.mrf.mxu1 }
 0x3c7   :  { %1277 = vst [vmem:[#allocation10 + $0x40] sm:$0xff] %v1261_v37  ;;  %v1264_v39 = vadd.f32 %v2155_v34, %v1227_v50  ;;  %v1219_v41 = vadd.f32 %v1218_v38, %v1073_v25 }
 0x3c8   :  { %v1640_v59 = vpop.f32.mrf.mxu1 }
 0x3c9   :  { %1280 = vst [vmem:[#allocation10 + $0x58] sm:$0xff] %v1264_v39  ;;  %v1262_v56 = vadd.f32 %v2155_v34, %v1219_v41  ;;  %v1240_v45 = vadd.f32 %v1640_v59, %v1608_v33 }
 0x3ca   :  { %v1231_v47 = vpop.f32.mrf.mxu1 }
 0x3cb   :  { %1278 = vst [vmem:[#allocation10 + $0x48] sm:$0xff] %v1262_v56  ;;  %v1267_v62 = vadd.f32 %v2155_v34, %v1240_v45  ;;  %v1232_v48 = vadd.f32 %v1231_v47, %v1086_v36 }
 0x3cc   :  { %v1641_v57 = vpop.f32.mrf.mxu1 }
 0x3cd   :  { %1283 = vst [vmem:[#allocation10 + $0x70] sm:$0xff] %v1267_v62  ;;  %v1265_v58 = vadd.f32 %v2155_v34, %v1232_v48  ;;  %v1243_v60 = vadd.f32 %v1641_v57, %v1609_v54 }
 0x3ce   :  { %v1234_v9 = vpop.f32.mrf.mxu1 }
 0x3cf   :  { %1281 = vst [vmem:[#allocation10 + $0x60] sm:$0xff] %v1265_v58  ;;  %v1268_v61 = vadd.f32 %v2155_v34, %v1243_v60  ;;  %v1235_v7 = vadd.f32 %v1234_v9, %v1089_v17 }
 0x3d1   :  { %1284 = vst [vmem:[#allocation10 + $0x78] sm:$0xff] %v1268_v61  ;;  %v1266_v24 = vadd.f32 %v2155_v34, %v1235_v7 }
 0x3d3   :  { %1282 = vst [vmem:[#allocation10 + $0x68] sm:$0xff] %v1266_v24 }
 0x3d4   :  { %1793 = shalt.err (!%p1790_p10)
}
 0x3d5   :  { %s1818_s21 = smov 128   ;;  %s1819_s22 = smov 8  }
 0x3d6   :  { %1296 = dma.vmem_to_hbm [thread:$0]  %s1291_s19, 2048, %s2185_s9, [#allocation4], %s1818_s21, %s1818_s21, %s1819_s22  }
 0x3d7   :  { %1808 = dma.done.wait [#allocation4], 2048  }
 0x3d8   :  { %1809 = vsyncadd [#allocation4], 4294965248 }
 0x3d9   :  { %1300 = vsyncpa [#allocation3], 1 }
 0x3da   :  { %1301 = vsyncpa [#allocation6], 1 }
 0x3db   :  { %1302 = vsyncpa [#allocation9], 1 }
 0x3dc   :  { %1303 = vsyncpa [#allocation4], 1 }

</bundles_post_ra>
